<compile_context>
chip_gen: v5e
topology: v5e:2x2
jax: 0.10.0
libtpu: 0.0.40
codegen_flags: <defaults>
</compile_context>

<pallas_src>
import jax
import jax.numpy as jnp
from jax import lax
from jax.experimental import pallas as pl
from jax.experimental.pallas import tpu as pltpu


def _mlp_kernel(x_ref, w1_ref, b1_ref, w2_ref, b2_ref, w3_ref, b3_ref, o_ref):
    # Layer 1: [TB, 2*ndim] @ [2*ndim, hls] + [1, hls] -> tanh
    h1 = jnp.tanh(
        jnp.dot(x_ref[...], w1_ref[...], preferred_element_type=jnp.float32)
        + b1_ref[...]
    )
    # Layer 2: [TB, hls] @ [hls, hls] + [1, hls] -> tanh
    h2 = jnp.tanh(
        jnp.dot(h1, w2_ref[...], preferred_element_type=jnp.float32)
        + b2_ref[...]
    )
    # Layer 3, lane-dense: contract the hls axis of w3 [1, hls] with the hls
    # axis of h2 [TB, hls] -> [1, TB].  This keeps the final store a full
    # 128-lane-wide row instead of a masked [TB, 1] column store.
    z3 = lax.dot_general(
        w3_ref[...], h2,
        dimension_numbers=(((1,), (1,)), ((), ())),
        preferred_element_type=jnp.float32,
    )
    out_row = jnp.tanh(z3 + b3_ref[...])            # [1, TB]
    o_ref[...] = out_row[None].astype(o_ref.dtype)  # [1, 1, TB]


def basic_nn_forward(x, params, *, tile_b=512):
    """Fused forward pass of BasicNN.

    x: [B, 2*ndim] float32
    params: dict with
        w1t [2*ndim, hls], b1 [1, hls],
        w2t [hls, hls],    b2 [1, hls],
        w3  [1, hls] (original fc3.weight orientation), b3 [1, 1]
    returns: [B, 1] float32
    """
    B, in_dim = x.shape
    hls = params["w1t"].shape[1]
    assert tile_b % 128 == 0, "tile_b must be a multiple of 128 (lane-dense out)"

    num_tiles = pl.cdiv(B, tile_b)
    b_pad = num_tiles * tile_b
    if b_pad != B:
        # Pad the batch; padded rows are computed (cheap) and dropped below.
        x = jnp.pad(x, ((0, b_pad - B), (0, 0)))

    out3 = pl.pallas_call(
        _mlp_kernel,
        out_shape=jax.ShapeDtypeStruct((num_tiles, 1, tile_b), x.dtype),
        grid_spec=pltpu.PrefetchScalarGridSpec(
            num_scalar_prefetch=0,
            grid=(num_tiles,),
            in_specs=[
                # x: tile over batch (sublane axis), full feature width.
                pl.BlockSpec((tile_b, in_dim), lambda i: (i, 0)),
                # weights / biases: full arrays, same block every step
                # (constant index_map -> not re-DMA'd per iteration).
                pl.BlockSpec((in_dim, hls), lambda i: (0, 0)),
                pl.BlockSpec((1, hls), lambda i: (0, 0)),
                pl.BlockSpec((hls, hls), lambda i: (0, 0)),
                pl.BlockSpec((1, hls), lambda i: (0, 0)),
                pl.BlockSpec((1, hls), lambda i: (0, 0)),
                pl.BlockSpec((1, 1), lambda i: (0, 0)),
            ],
            # Lane-dense output block: last dim = tile_b (multiple of 128).
            out_specs=pl.BlockSpec((1, 1, tile_b), lambda i: (i, 0, 0)),
        ),
        compiler_params=pltpu.CompilerParams(
            dimension_semantics=("parallel",),
            # Explicit scoped-VMEM limit so very large tile_b stays portable
            # to v7x (64 MiB physical VMEM) without silent fallback.
            vmem_limit_bytes=48 * 1024 * 1024,
        ),
    )(x, params["w1t"], params["b1"], params["w2t"], params["b2"],
      params["w3"], params["b3"])

    # (num_tiles, 1, tile_b) -> row-major flatten preserves batch order.
    return out3.reshape(b_pad)[:B].reshape(B, 1)


def init_params(ndim, key):
    """Deterministic parameter init mirroring BasicNN.__init__ shapes.

    fc1: Linear(2*ndim, hls), fc2: Linear(hls, hls), fc3: Linear(hls, 1)
    fc1 / fc3 weights ~ N(0, 0.1) (as in the module); fc2 weight + all biases
    use small uniform init (PyTorch default-style), values fixed by the key.
    """
    hls = round(8 * ndim / 3)
    in1 = 2 * ndim
    k = jax.random.split(key, 6)

    w1 = 0.1 * jax.random.normal(k[0], (hls, in1), jnp.float32)      # fc1.weight
    b1 = jax.random.uniform(k[1], (hls,), jnp.float32,
                            minval=-1.0 / jnp.sqrt(in1), maxval=1.0 / jnp.sqrt(in1))
    w2 = jax.random.uniform(k[2], (hls, hls), jnp.float32,
                            minval=-1.0 / jnp.sqrt(hls), maxval=1.0 / jnp.sqrt(hls))
    b2 = jax.random.uniform(k[3], (hls,), jnp.float32,
                            minval=-1.0 / jnp.sqrt(hls), maxval=1.0 / jnp.sqrt(hls))
    w3 = 0.1 * jax.random.normal(k[4], (1, hls), jnp.float32)        # fc3.weight
    b3 = jax.random.uniform(k[5], (1,), jnp.float32,
                            minval=-1.0 / jnp.sqrt(hls), maxval=1.0 / jnp.sqrt(hls))

    # fc1/fc2 weights pre-transposed to [in, out]; fc3 kept as [1, hls] so the
    # kernel can emit a lane-dense [1, tile_b] output directly.
    return {
        "w1t": w1.T, "b1": b1.reshape(1, hls),
        "w2t": w2.T, "b2": b2.reshape(1, hls),
        "w3": w3,    "b3": b3.reshape(1, 1),
    }


def reference_forward(x, params):
    h1 = jnp.tanh(x @ params["w1t"] + params["b1"])
    h2 = jnp.tanh(h1 @ params["w2t"] + params["b2"])
    return jnp.tanh(h2 @ params["w3"].T + params["b3"])


if __name__ == "__main__":
    ndim = 12                      # -> in_features = 24, hidden = round(96/3) = 32
    key = jax.random.PRNGKey(0)
    kx, kp, kx2 = jax.random.split(key, 3)
    params = init_params(ndim, kp)

    # Case 1: batch not a multiple of tile_b -> exercises the padding path.
    batch = 200
    x = jax.random.normal(kx, (batch, 2 * ndim), jnp.float32)
    out = jax.block_until_ready(basic_nn_forward(x, params, tile_b=512))
    ref = reference_forward(x, params)
    assert out.shape == (batch, 1)
    assert jnp.allclose(out, ref, atol=1e-5, rtol=1e-5), "mismatch vs reference (padded)"

    # Case 2: multiple grid steps (grid = 2).
    batch2 = 1024
    x2 = jax.random.normal(kx2, (batch2, 2 * ndim), jnp.float32)
    out2 = jax.block_until_ready(basic_nn_forward(x2, params, tile_b=512))
    ref2 = reference_forward(x2, params)
    assert out2.shape == (batch2, 1)
    assert jnp.allclose(out2, ref2, atol=1e-5, rtol=1e-5), "mismatch vs reference (multi-tile)"

    print("KERNEL_OK")
</pallas_src>

<mosaic_0001>
module attributes {stable_mosaic.version = 11 : i64} {
  func.func @_mlp_kernel(%arg0: i32, %arg1: memref<512x24xf32, #tpu.memory_space<vmem>>, %arg2: memref<24x32xf32, #tpu.memory_space<vmem>>, %arg3: memref<1x32xf32, #tpu.memory_space<vmem>>, %arg4: memref<32x32xf32, #tpu.memory_space<vmem>>, %arg5: memref<1x32xf32, #tpu.memory_space<vmem>>, %arg6: memref<1x32xf32, #tpu.memory_space<vmem>>, %arg7: memref<1x1xf32, #tpu.memory_space<vmem>>, %arg8: memref<1x1x512xf32, #tpu.memory_space<vmem>>) attributes {dimension_semantics = [#tpu.dimension_semantics<parallel>], iteration_bounds = array<i64: 1>, scalar_prefetch = 0 : i64, scratch_operands = 0 : i64, tpu.core_type = #tpu.core_type<tc>, window_params = [{transform_indices = @transform_0, window_bounds = array<i64: 512, 24>}, {pipeline_mode = #tpu.pipeline_mode<synchronous>, transform_indices = @transform_1, window_bounds = array<i64: 24, 32>}, {pipeline_mode = #tpu.pipeline_mode<synchronous>, transform_indices = @transform_2, window_bounds = array<i64: 1, 32>}, {pipeline_mode = #tpu.pipeline_mode<synchronous>, transform_indices = @transform_3, window_bounds = array<i64: 32, 32>}, {pipeline_mode = #tpu.pipeline_mode<synchronous>, transform_indices = @transform_4, window_bounds = array<i64: 1, 32>}, {pipeline_mode = #tpu.pipeline_mode<synchronous>, transform_indices = @transform_5, window_bounds = array<i64: 1, 32>}, {pipeline_mode = #tpu.pipeline_mode<synchronous>, transform_indices = @transform_6, window_bounds = array<i64: 1, 1>}, {transform_indices = @transform_7, window_bounds = array<i64: 1, 1, 512>}]} {
    %c0 = arith.constant 0 : index
    %c0_0 = arith.constant 0 : index
    %0 = vector.load %arg1[%c0, %c0_0] : memref<512x24xf32, #tpu.memory_space<vmem>>, vector<512x24xf32>
    %c0_1 = arith.constant 0 : index
    %c0_2 = arith.constant 0 : index
    %1 = vector.load %arg2[%c0_1, %c0_2] : memref<24x32xf32, #tpu.memory_space<vmem>>, vector<24x32xf32>
    %cst = arith.constant dense<0.000000e+00> : vector<512x32xf32>
    %2 = tpu.matmul %0, %1, %cst {dimension_numbers = #tpu.dot_dimension_numbers<[1], [0], [0], [1], [0, 0, 1, 1], [], []>} : vector<512x24xf32>, vector<24x32xf32>, vector<512x32xf32> -> vector<512x32xf32>
    %c0_3 = arith.constant 0 : index
    %c0_4 = arith.constant 0 : index
    %3 = vector.load %arg3[%c0_3, %c0_4] : memref<1x32xf32, #tpu.memory_space<vmem>>, vector<1x32xf32>
    %4 = vector.broadcast %3 : vector<1x32xf32> to vector<512x32xf32>
    %5 = arith.addf %2, %4 : vector<512x32xf32>
    %6 = math.tanh %5 : vector<512x32xf32>
    %c0_5 = arith.constant 0 : index
    %c0_6 = arith.constant 0 : index
    %7 = vector.load %arg4[%c0_5, %c0_6] : memref<32x32xf32, #tpu.memory_space<vmem>>, vector<32x32xf32>
    %cst_7 = arith.constant dense<0.000000e+00> : vector<512x32xf32>
    %8 = tpu.matmul %6, %7, %cst_7 {dimension_numbers = #tpu.dot_dimension_numbers<[1], [0], [0], [1], [0, 0, 1, 1], [], []>} : vector<512x32xf32>, vector<32x32xf32>, vector<512x32xf32> -> vector<512x32xf32>
    %c0_8 = arith.constant 0 : index
    %c0_9 = arith.constant 0 : index
    %9 = vector.load %arg5[%c0_8, %c0_9] : memref<1x32xf32, #tpu.memory_space<vmem>>, vector<1x32xf32>
    %10 = vector.broadcast %9 : vector<1x32xf32> to vector<512x32xf32>
    %11 = arith.addf %8, %10 : vector<512x32xf32>
    %12 = math.tanh %11 : vector<512x32xf32>
    %c0_10 = arith.constant 0 : index
    %c0_11 = arith.constant 0 : index
    %13 = vector.load %arg6[%c0_10, %c0_11] : memref<1x32xf32, #tpu.memory_space<vmem>>, vector<1x32xf32>
    %cst_12 = arith.constant dense<0.000000e+00> : vector<1x512xf32>
    %14 = tpu.matmul %13, %12, %cst_12 {dimension_numbers = #tpu.dot_dimension_numbers<[1], [1], [0], [0], [0, 0, 1, 0], [], []>} : vector<1x32xf32>, vector<512x32xf32>, vector<1x512xf32> -> vector<1x512xf32>
    %c0_13 = arith.constant 0 : index
    %c0_14 = arith.constant 0 : index
    %15 = vector.load %arg7[%c0_13, %c0_14] : memref<1x1xf32, #tpu.memory_space<vmem>>, vector<1x1xf32>
    %16 = vector.broadcast %15 : vector<1x1xf32> to vector<1x512xf32>
    %17 = arith.addf %14, %16 : vector<1x512xf32>
    %18 = math.tanh %17 : vector<1x512xf32>
    %19 = vector.shape_cast %18 : vector<1x512xf32> to vector<1x1x512xf32>
    %c0_15 = arith.constant 0 : index
    %c0_16 = arith.constant 0 : index
    %c0_17 = arith.constant 0 : index
    %20 = vector.load %arg8[%c0_15, %c0_16, %c0_17] : memref<1x1x512xf32, #tpu.memory_space<vmem>>, vector<1x1x512xf32>
    tpu.vector_store %arg8[%c0_15, %c0_16, %c0_17], %19 {strides = array<i32>} : memref<1x1x512xf32, #tpu.memory_space<vmem>>, vector<1x1x512xf32>,
    return
  }
  func.func @transform_0(%arg0: i32) -> (i32, i32) {
    %c0_i32 = arith.constant 0 : i32
    %c0_i32_0 = arith.constant 0 : i32
    return %arg0, %c0_i32 : i32, i32
  }
  func.func @transform_1(%arg0: i32) -> (i32, i32) {
    %c0_i32 = arith.constant 0 : i32
    %c0_i32_0 = arith.constant 0 : i32
    %c0_i32_1 = arith.constant 0 : i32
    return %c0_i32, %c0_i32_0 : i32, i32
  }
  func.func @transform_2(%arg0: i32) -> (i32, i32) {
    %c0_i32 = arith.constant 0 : i32
    %c0_i32_0 = arith.constant 0 : i32
    %c0_i32_1 = arith.constant 0 : i32
    return %c0_i32, %c0_i32_0 : i32, i32
  }
  func.func @transform_3(%arg0: i32) -> (i32, i32) {
    %c0_i32 = arith.constant 0 : i32
    %c0_i32_0 = arith.constant 0 : i32
    %c0_i32_1 = arith.constant 0 : i32
    return %c0_i32, %c0_i32_0 : i32, i32
  }
  func.func @transform_4(%arg0: i32) -> (i32, i32) {
    %c0_i32 = arith.constant 0 : i32
    %c0_i32_0 = arith.constant 0 : i32
    %c0_i32_1 = arith.constant 0 : i32
    return %c0_i32, %c0_i32_0 : i32, i32
  }
  func.func @transform_5(%arg0: i32) -> (i32, i32) {
    %c0_i32 = arith.constant 0 : i32
    %c0_i32_0 = arith.constant 0 : i32
    %c0_i32_1 = arith.constant 0 : i32
    return %c0_i32, %c0_i32_0 : i32, i32
  }
  func.func @transform_6(%arg0: i32) -> (i32, i32) {
    %c0_i32 = arith.constant 0 : i32
    %c0_i32_0 = arith.constant 0 : i32
    %c0_i32_1 = arith.constant 0 : i32
    return %c0_i32, %c0_i32_0 : i32, i32
  }
  func.func @transform_7(%arg0: i32) -> (i32, i32, i32) {
    %c0_i32 = arith.constant 0 : i32
    %c0_i32_0 = arith.constant 0 : i32
    %c0_i32_1 = arith.constant 0 : i32
    return %arg0, %c0_i32, %c0_i32_0 : i32, i32, i32
  }
}

</mosaic_0001>

<bundles_post_ra>
// kernel: tpu_custom_call.1
= control target key start
LH: loop header
LB: loop body
LE: loop exit
PB: predicated region body
PF: predicated region fallthrough
CT: control target
= control target key end

     0   :  { %s2602_s0 = inlined_call_operand.vmem [shape: f32[512,24], index: 0, kind: input, shape index: {}]   ;;  %s2603_s1 = inlined_call_operand.vmem [shape: f32[24,32], index: 1, kind: input, shape index: {}]   ;;  %s2604_s2 = inlined_call_operand.vmem [shape: f32[1,32], index: 2, kind: input, shape index: {}]   ;;  %s2605_s3 = inlined_call_operand.vmem [shape: f32[32,32], index: 3, kind: input, shape index: {}]   ;;  %s2606_s4 = inlined_call_operand.vmem [shape: f32[1,32], index: 4, kind: input, shape index: {}]   ;;  %s2607_s5 = inlined_call_operand.vmem [shape: f32[1,32], index: 5, kind: input, shape index: {}]   ;;  %s2608_s6 = inlined_call_operand.<no memory space> [shape: f32[1,1], index: 6, kind: input, shape index: {}]   ;;  %s2609_s7 = inlined_call_operand.hbm [shape: f32[1,1,512], index: 7, kind: output, shape index: {}]  }
   0x1   :  { %v12_v0 = vstv %s2608_s6 }
   0x2   :  { %13 = vst [vmem:[#allocation2] sm:$0x1] %v12_v0 }
   0x3   :  { %v95_v1 = vld [vmem:[%s2603_s1 + $0x10] sm:$0xff]  ;;  %v94_v2 = vld [vmem:[%s2603_s1 + $0x8] sm:$0xff]  ;;  %v93_v3 = vld [vmem:[%s2603_s1] sm:$0xff]  ;;  %vm100_vm0 = vcmask 195584  }
   0x4   :  { %306 = vmatpush.msra.mxu0 %v95_v1  ;;  %1558 = vmatpush.msra.mxu3 %v95_v1  ;;  %v29_v4 = vld [vmem:[%s2602_s0] sm:$0xff] }
   0x6   :  { %307 = vmatpush.msra.mxu0 %v94_v2  ;;  %1559 = vmatpush.msra.mxu3 %v94_v2 }
   0x7   :  { %14 = vsyncpa [#allocation4], 0  ;;  %v30_v5 = vld [vmem:[%s2602_s0 + $0x8] sm:$0xff]  ;;  %v31_v6 = vld [vmem:[%s2602_s0 + $0x10] sm:$0xff]  ;;  %vm574_vm1 = vcmask 261120   ;;  %vm1334_vm2 = vcmask 1040384  }
   0x8   :  { %308 = vmatpush.msra.mxu0 %v93_v3  ;;  %1560 = vmatpush.msra.mxu3 %v93_v3  ;;  %v32_v7 = vld [vmem:[%s2602_s0 + $0x18] sm:$0xff]  ;;  %v33_v8 = vld [vmem:[%s2602_s0 + $0x20] sm:$0xff]  ;;  %v34_v9 = vld [vmem:[%s2602_s0 + $0x28] sm:$0xff]  ;;  %vm1336_vm3 = vcmask 1042434   ;;  %s1353_s18 = sshll.u32 %s2609_s7, 4  ;;  %vm1338_vm4 = vcmask 1041408   ;;  %s1354_s18 = int_to_ptr.hbm [resolvable:$true] %s1353_s18 }
   0x9   :  { %1362 = vmatmul.msk.f32.vlgmr.msra.gmra.mxu0 %vm100_vm0, %v29_v4  ;;  %v35_v10 = vld [vmem:[%s2602_s0 + $0x30] sm:$0xff]  ;;  %v36_v11 = vld [vmem:[%s2602_s0 + $0x38] sm:$0xff]  ;;  %v66_v12 = vld [vmem:[%s2602_s0 + $0x128] sm:$0xff] }
   0xa   :  { %1399 = vmatmul.msk.f32.vlgmr.msra.gmra.mxu3 %vm100_vm0, %v66_v12  ;;  %v37_v13 = vld [vmem:[%s2602_s0 + $0x40] sm:$0xff]  ;;  %v67_v14 = vld [vmem:[%s2602_s0 + $0x130] sm:$0xff]  ;;  %v38_v15 = vld [vmem:[%s2602_s0 + $0x48] sm:$0xff] }
   0xb   :  { %v68_v16 = vld [vmem:[%s2602_s0 + $0x138] sm:$0xff]  ;;  %v39_v17 = vld [vmem:[%s2602_s0 + $0x50] sm:$0xff]  ;;  %v69_v18 = vld [vmem:[%s2602_s0 + $0x140] sm:$0xff] }
   0xc   :  { %v40_v19 = vld [vmem:[%s2602_s0 + $0x58] sm:$0xff]  ;;  %v70_v20 = vld [vmem:[%s2602_s0 + $0x148] sm:$0xff]  ;;  %v41_v21 = vld [vmem:[%s2602_s0 + $0x60] sm:$0xff] }
   0xd   :  { %v569_v22 = vld [vmem:[%s2605_s3 + $0x18] sm:$0xff]  ;;  %v71_v23 = vld [vmem:[%s2602_s0 + $0x150] sm:$0xff]  ;;  %v567_v25 = vld [vmem:[%s2605_s3 + $0x8] sm:$0xff] }
   0xe   :  { %779 = vmatpush.msra.mxu1 %v569_v22  ;;  %v568_v24 = vld [vmem:[%s2605_s3 + $0x10] sm:$0xff]  ;;  %1561 = vmatpush.msra.mxu2 %v569_v22  ;;  %v42_v26 = vld [vmem:[%s2602_s0 + $0x68] sm:$0xff]  ;;  %v566_v27 = vld [vmem:[%s2605_s3] sm:$0xff] }
   0xf   :  { %v72_v28 = vld [vmem:[%s2602_s0 + $0x158] sm:$0xff]  ;;  %v43_v29 = vld [vmem:[%s2602_s0 + $0x70] sm:$0xff]  ;;  %v73_v30 = vld [vmem:[%s2602_s0 + $0x160] sm:$0xff] }
  0x10   :  { %780 = vmatpush.msra.mxu1 %v568_v24  ;;  %1562 = vmatpush.msra.mxu2 %v568_v24  ;;  %v44_v31 = vld [vmem:[%s2602_s0 + $0x78] sm:$0xff]  ;;  %v74_v32 = vld [vmem:[%s2602_s0 + $0x168] sm:$0xff]  ;;  %v2029_v33 = vld [vmem:[%s2604_s2] ss:$0 sm:$0xff] }
  0x11   :  { %1363 = vmatmul.msk.f32.gmra.mxu0 %vm100_vm0, %v30_v5  ;;  %v45_v35 = vld [vmem:[%s2602_s0 + $0x80] sm:$0xff]  ;;  %v75_v37 = vld [vmem:[%s2602_s0 + $0x170] sm:$0xff]  ;;  %v46_v39 = vld [vmem:[%s2602_s0 + $0x88] sm:$0xff] }
  0x12   :  { %1400 = vmatmul.msk.f32.gmra.mxu3 %vm100_vm0, %v67_v14  ;;  %781 = vmatpush.msra.mxu1 %v567_v25  ;;  %v76_v42 = vld [vmem:[%s2602_s0 + $0x178] sm:$0xff]  ;;  %v47_v44 = vld [vmem:[%s2602_s0 + $0x90] sm:$0xff]  ;;  %v77_v47 = vld [vmem:[%s2602_s0 + $0x180] sm:$0xff] }
  0x13   :  { %1563 = vmatpush.msra.mxu2 %v567_v25  ;;  %v48_v49 = vld [vmem:[%s2602_s0 + $0x98] sm:$0xff]  ;;  %v78_v52 = vld [vmem:[%s2602_s0 + $0x188] sm:$0xff]  ;;  %v49_v54 = vld [vmem:[%s2602_s0 + $0xa0] sm:$0xff] }
  0x14   :  { %782 = vmatpush.msra.mxu1 %v566_v27  ;;  %v79_v57 = vld [vmem:[%s2602_s0 + $0x190] sm:$0xff]  ;;  %v50_v59 = vld [vmem:[%s2602_s0 + $0xa8] sm:$0xff]  ;;  %v80_v62 = vld [vmem:[%s2602_s0 + $0x198] sm:$0xff] }
  0x15   :  { %1564 = vmatpush.msra.mxu2 %v566_v27  ;;  %v51_v0 = vld [vmem:[%s2602_s0 + $0xb0] sm:$0xff]  ;;  %v81_v3 = vld [vmem:[%s2602_s0 + $0x1a0] sm:$0xff]  ;;  %v52_v5 = vld [vmem:[%s2602_s0 + $0xb8] sm:$0xff] }
  0x16   :  { %v83_v14 = vld [vmem:[%s2602_s0 + $0x1b0] sm:$0xff]  ;;  %v85_v27 = vld [vmem:[%s2602_s0 + $0x1c0] sm:$0xff] }
  0x19   :  { %1364 = vmatmul.msk.f32.gmra.mxu0 %vm100_vm0, %v31_v6 }
  0x1a   :  { %1401 = vmatmul.msk.f32.gmra.mxu3 %vm100_vm0, %v68_v16 }
  0x21   :  { %1365 = vmatmul.msk.f32.gmra.mxu0 %vm100_vm0, %v32_v7 }
  0x22   :  { %1402 = vmatmul.msk.f32.gmra.mxu3 %vm100_vm0, %v69_v18 }
  0x29   :  { %1366 = vmatmul.msk.f32.gmra.mxu0 %vm100_vm0, %v33_v8  ;;  %v82_v8 = vld [vmem:[%s2602_s0 + $0x1a8] sm:$0xff] }
  0x2a   :  { %1403 = vmatmul.msk.f32.gmra.mxu3 %vm100_vm0, %v70_v20  ;;  %v84_v20 = vld [vmem:[%s2602_s0 + $0x1b8] sm:$0xff] }
  0x31   :  { %1367 = vmatmul.msk.f32.gmra.mxu0 %vm100_vm0, %v34_v9 }
  0x32   :  { %1404 = vmatmul.msk.f32.gmra.mxu3 %vm100_vm0, %v71_v23  ;;  %v55_v23 = vld [vmem:[%s2602_s0 + $0xd0] sm:$0xff] }
  0x39   :  { %1368 = vmatmul.msk.f32.gmra.mxu0 %vm100_vm0, %v35_v10 }
  0x3a   :  { %1405 = vmatmul.msk.f32.gmra.mxu3 %vm100_vm0, %v72_v28 }
  0x41   :  { %1369 = vmatmul.msk.f32.gmra.mxu0 %vm100_vm0, %v36_v11  ;;  %v53_v11 = vld [vmem:[%s2602_s0 + $0xc0] sm:$0xff] }
  0x42   :  { %1406 = vmatmul.msk.f32.gmra.mxu3 %vm100_vm0, %v73_v30 }
  0x49   :  { %1370 = vmatmul.msk.f32.gmra.mxu0 %vm100_vm0, %v37_v13 }
  0x4a   :  { %1407 = vmatmul.msk.f32.gmra.mxu3 %vm100_vm0, %v74_v32 }
  0x51   :  { %1371 = vmatmul.msk.f32.gmra.mxu0 %vm100_vm0, %v38_v15 }
  0x52   :  { %1408 = vmatmul.msk.f32.gmra.mxu3 %vm100_vm0, %v75_v37 }
  0x59   :  { %1372 = vmatmul.msk.f32.gmra.mxu0 %vm100_vm0, %v39_v17  ;;  %v54_v17 = vld [vmem:[%s2602_s0 + $0xc8] sm:$0xff] }
  0x5a   :  { %1409 = vmatmul.msk.f32.gmra.mxu3 %vm100_vm0, %v76_v42 }
  0x61   :  { %1373 = vmatmul.msk.f32.gmra.mxu0 %vm100_vm0, %v40_v19 }
  0x62   :  { %1410 = vmatmul.msk.f32.gmra.mxu3 %vm100_vm0, %v77_v47 }
  0x69   :  { %1374 = vmatmul.msk.f32.gmra.mxu0 %vm100_vm0, %v41_v21 }
  0x6a   :  { %1411 = vmatmul.msk.f32.gmra.mxu3 %vm100_vm0, %v78_v52  ;;  %v88_v52 = vld [vmem:[%s2602_s0 + $0x1d8] sm:$0xff] }
  0x71   :  { %1375 = vmatmul.msk.f32.gmra.mxu0 %vm100_vm0, %v42_v26 }
  0x72   :  { %1412 = vmatmul.msk.f32.gmra.mxu3 %vm100_vm0, %v79_v57 }
  0x79   :  { %1376 = vmatmul.msk.f32.gmra.mxu0 %vm100_vm0, %v43_v29 }
  0x7a   :  { %1413 = vmatmul.msk.f32.gmra.mxu3 %vm100_vm0, %v80_v62 }
  0x81   :  { %1377 = vmatmul.msk.f32.gmra.mxu0 %vm100_vm0, %v44_v31  ;;  %v56_v31 = vld [vmem:[%s2602_s0 + $0xd8] sm:$0xff] }
  0x82   :  { %1414 = vmatmul.msk.f32.gmra.mxu3 %vm100_vm0, %v81_v3 }
  0x86   :  { %v310_v34 = vpop.f32.mrf.mxu0 }
  0x87   :  { %v311_v36 = vadd.f32 %v2029_v33, %v310_v34 }
  0x89   :  { %1570 = vtanh.f32 %v311_v36  ;;  %1378 = vmatmul.msk.f32.gmra.mxu0 %vm100_vm0, %v45_v35  ;;  %v86_v36 = vld [vmem:[%s2602_s0 + $0x1c8] sm:$0xff] }
  0x8a   :  { %1415 = vmatmul.msk.f32.gmra.mxu3 %vm100_vm0, %v82_v8  ;;  %v61_v8 = vld [vmem:[%s2602_s0 + $0x100] sm:$0xff] }
  0x8d   :  { %v2110_v9 = vpop.f32.mrf.mxu3 }
  0x8e   :  { %v313_v38 = vpop.f32.mrf.mxu0 }
  0x8f   :  { %v1571_v40 = vpop.eup %1570  ;;  %v314_v41 = vadd.f32 %v2029_v33, %v313_v38 }
  0x90   :  { %1426 = vmatmul.msk.f32.vlgmr.msra.gmra.mxu1 %vm574_vm1, %v1571_v40  ;;  %v57_v40 = vld [vmem:[%s2602_s0 + $0xe0] sm:$0xff] }
  0x91   :  { %1572 = vtanh.f32 %v314_v41  ;;  %1379 = vmatmul.msk.f32.gmra.mxu0 %vm100_vm0, %v46_v39 }
  0x92   :  { %1416 = vmatmul.msk.f32.gmra.mxu3 %vm100_vm0, %v83_v14 }
  0x95   :  { %v2122_v15 = vpop.f32.mrf.mxu3 }
  0x96   :  { %v316_v43 = vpop.f32.mrf.mxu0 }
  0x97   :  { %v1573_v45 = vpop.eup %1572  ;;  %v317_v46 = vadd.f32 %v2029_v33, %v316_v43 }
  0x98   :  { %1427 = vmatmul.msk.f32.gmra.mxu1 %vm574_vm1, %v1573_v45 }
  0x99   :  { %1574 = vtanh.f32 %v317_v46  ;;  %1380 = vmatmul.msk.f32.gmra.mxu0 %vm100_vm0, %v47_v44  ;;  %v87_v44 = vld [vmem:[%s2602_s0 + $0x1d0] sm:$0xff] }
  0x9a   :  { %1417 = vmatmul.msk.f32.gmra.mxu3 %vm100_vm0, %v84_v20 }
  0x9d   :  { %v427_v21 = vpop.f32.mrf.mxu3 }
  0x9e   :  { %v319_v48 = vpop.f32.mrf.mxu0  ;;  %v428_v24 = vadd.f32 %v2029_v33, %v427_v21 }
  0x9f   :  { %v1575_v50 = vpop.eup %1574  ;;  %v320_v51 = vadd.f32 %v2029_v33, %v319_v48  ;;  %v58_v48 = vld [vmem:[%s2602_s0 + $0xe8] sm:$0xff] }
  0xa0   :  { %1428 = vmatmul.msk.f32.gmra.mxu1 %vm574_vm1, %v1575_v50 }
  0xa1   :  { %1576 = vtanh.f32 %v320_v51  ;;  %1381 = vmatmul.msk.f32.gmra.mxu0 %vm100_vm0, %v48_v49 }
  0xa2   :  { %1418 = vmatmul.msk.f32.gmra.mxu3 %vm100_vm0, %v85_v27  ;;  %v63_v27 = vld [vmem:[%s2602_s0 + $0x110] sm:$0xff] }
  0xa5   :  { %v430_v28 = vpop.f32.mrf.mxu3 }
  0xa6   :  { %v322_v53 = vpop.f32.mrf.mxu0  ;;  %v431_v32 = vadd.f32 %v2029_v33, %v430_v28 }
  0xa7   :  { %v1577_v55 = vpop.eup %1576  ;;  %v323_v56 = vadd.f32 %v2029_v33, %v322_v53 }
  0xa8   :  { %1429 = vmatmul.msk.f32.gmra.mxu1 %vm574_vm1, %v1577_v55 }
  0xa9   :  { %1578 = vtanh.f32 %v323_v56  ;;  %1382 = vmatmul.msk.f32.gmra.mxu0 %vm100_vm0, %v49_v54  ;;  %v59_v56 = vld [vmem:[%s2602_s0 + $0xf0] sm:$0xff] }
  0xaa   :  { %1419 = vmatmul.msk.f32.gmra.mxu3 %vm100_vm0, %v86_v36  ;;  %v64_v36 = vld [vmem:[%s2602_s0 + $0x118] sm:$0xff] }
  0xad   :  { %v433_v37 = vpop.f32.mrf.mxu3 }
  0xae   :  { %v325_v58 = vpop.f32.mrf.mxu0  ;;  %v434_v41 = vadd.f32 %v2029_v33, %v433_v37 }
  0xaf   :  { %v1579_v60 = vpop.eup %1578  ;;  %v326_v61 = vadd.f32 %v2029_v33, %v325_v58 }
  0xb0   :  { %1430 = vmatmul.msk.f32.gmra.mxu1 %vm574_vm1, %v1579_v60  ;;  %v89_v60 = vld [vmem:[%s2602_s0 + $0x1e0] sm:$0xff] }
  0xb1   :  { %1580 = vtanh.f32 %v326_v61  ;;  %1383 = vmatmul.msk.f32.gmra.mxu0 %vm100_vm0, %v50_v59 }
  0xb2   :  { %1420 = vmatmul.msk.f32.gmra.mxu3 %vm100_vm0, %v87_v44  ;;  %v65_v44 = vld [vmem:[%s2602_s0 + $0x120] sm:$0xff] }
  0xb5   :  { %v436_v45 = vpop.f32.mrf.mxu3 }
  0xb6   :  { %v328_v63 = vpop.f32.mrf.mxu0  ;;  %v437_v49 = vadd.f32 %v2029_v33, %v436_v45 }
  0xb7   :  { %v1581_v1 = vpop.eup %1580  ;;  %v329_v2 = vadd.f32 %v2029_v33, %v328_v63 }
  0xb8   :  { %1431 = vmatmul.msk.f32.gmra.mxu1 %vm574_vm1, %v1581_v1 }
  0xb9   :  { %1582 = vtanh.f32 %v329_v2  ;;  %1384 = vmatmul.msk.f32.gmra.mxu0 %vm100_vm0, %v51_v0  ;;  %v60_v0 = vld [vmem:[%s2602_s0 + $0xf8] sm:$0xff] }
  0xba   :  { %1421 = vmatmul.msk.f32.gmra.mxu3 %vm100_vm0, %v88_v52 }
  0xbd   :  { %v439_v53 = vpop.f32.mrf.mxu3 }
  0xbe   :  { %v331_v4 = vpop.f32.mrf.mxu0  ;;  %v440_v57 = vadd.f32 %v2029_v33, %v439_v53 }
  0xbf   :  { %v1583_v6 = vpop.eup %1582  ;;  %v332_v7 = vadd.f32 %v2029_v33, %v331_v4  ;;  %v90_v4 = vld [vmem:[%s2602_s0 + $0x1e8] sm:$0xff] }
  0xc0   :  { %1432 = vmatmul.msk.f32.gmra.mxu1 %vm574_vm1, %v1583_v6 }
  0xc1   :  { %1584 = vtanh.f32 %v332_v7  ;;  %1385 = vmatmul.msk.f32.gmra.mxu0 %vm100_vm0, %v52_v5 }
  0xc2   :  { %1422 = vmatmul.msk.f32.gmra.mxu3 %vm100_vm0, %v89_v60 }
  0xc5   :  { %v442_v61 = vpop.f32.mrf.mxu3 }
  0xc6   :  { %v334_v10 = vpop.f32.mrf.mxu0  ;;  %v443_v1 = vadd.f32 %v2029_v33, %v442_v61 }
  0xc7   :  { %v1585_v12 = vpop.eup %1584  ;;  %v335_v13 = vadd.f32 %v2029_v33, %v334_v10 }
  0xc8   :  { %1433 = vmatmul.msk.f32.gmra.mxu1 %vm574_vm1, %v1585_v12 }
  0xc9   :  { %1586 = vtanh.f32 %v335_v13  ;;  %1386 = vmatmul.msk.f32.gmra.mxu0 %vm100_vm0, %v53_v11  ;;  %v91_v13 = vld [vmem:[%s2602_s0 + $0x1f0] sm:$0xff] }
  0xca   :  { %1423 = vmatmul.msk.f32.gmra.mxu3 %vm100_vm0, %v90_v4 }
  0xcd   :  { %v445_v5 = vpop.f32.mrf.mxu3 }
  0xce   :  { %v337_v16 = vpop.f32.mrf.mxu0  ;;  %v446_v10 = vadd.f32 %v2029_v33, %v445_v5 }
  0xcf   :  { %v1587_v18 = vpop.eup %1586  ;;  %v338_v19 = vadd.f32 %v2029_v33, %v337_v16 }
  0xd0   :  { %1434 = vmatmul.msk.f32.gmra.mxu1 %vm574_vm1, %v1587_v18 }
  0xd1   :  { %1588 = vtanh.f32 %v338_v19  ;;  %1387 = vmatmul.msk.f32.gmra.mxu0 %vm100_vm0, %v54_v17  ;;  %v62_v19 = vld [vmem:[%s2602_s0 + $0x108] sm:$0xff] }
  0xd2   :  { %1590 = vtanh.f32 %v428_v24  ;;  %1424 = vmatmul.msk.f32.gmra.mxu3 %vm100_vm0, %v91_v13 }
  0xd5   :  { %v448_v16 = vpop.f32.mrf.mxu3 }
  0xd6   :  { %v340_v22 = vpop.f32.mrf.mxu0  ;;  %v449_v20 = vadd.f32 %v2029_v33, %v448_v16 }
  0xd7   :  { %v1589_v25 = vpop.eup %1588  ;;  %v341_v26 = vadd.f32 %v2029_v33, %v340_v22 }
  0xd8   :  { %1435 = vmatmul.msk.f32.gmra.mxu1 %vm574_vm1, %v1589_v25  ;;  %v1591_v29 = vpop.eup %1590 }
  0xd9   :  { %1592 = vtanh.f32 %v341_v26  ;;  %1388 = vmatmul.msk.f32.gmra.mxu0 %vm100_vm0, %v55_v23  ;;  %1465 = vmatmul.msk.f32.vlgmr.msra.gmra.mxu2 %vm574_vm1, %v1591_v29  ;;  %v92_v23 = vld [vmem:[%s2602_s0 + $0x1f8] sm:$0xff] }
  0xda   :  { %1594 = vtanh.f32 %v431_v32  ;;  %1425 = vmatmul.msk.f32.gmra.mxu3 %vm100_vm0, %v92_v23 }
  0xdd   :  { %v451_v25 = vpop.f32.mrf.mxu3 }
  0xde   :  { %v343_v30 = vpop.f32.mrf.mxu0  ;;  %v452_v28 = vadd.f32 %v2029_v33, %v451_v25 }
  0xdf   :  { %v1593_v34 = vpop.eup %1592  ;;  %v344_v35 = vadd.f32 %v2029_v33, %v343_v30 }
  0xe0   :  { %1436 = vmatmul.msk.f32.gmra.mxu1 %vm574_vm1, %v1593_v34  ;;  %v1595_v38 = vpop.eup %1594 }
  0xe1   :  { %1596 = vtanh.f32 %v344_v35  ;;  %1389 = vmatmul.msk.f32.gmra.mxu0 %vm100_vm0, %v56_v31  ;;  %1466 = vmatmul.msk.f32.gmra.mxu2 %vm574_vm1, %v1595_v38 }
  0xe2   :  { %1598 = vtanh.f32 %v434_v41 }
  0xe5   :  { %v454_v34 = vpop.f32.mrf.mxu3 }
  0xe6   :  { %v346_v39 = vpop.f32.mrf.mxu0  ;;  %v455_v37 = vadd.f32 %v2029_v33, %v454_v34 }
  0xe7   :  { %v1597_v42 = vpop.eup %1596  ;;  %v347_v43 = vadd.f32 %v2029_v33, %v346_v39 }
  0xe8   :  { %1437 = vmatmul.msk.f32.gmra.mxu1 %vm574_vm1, %v1597_v42  ;;  %v1599_v46 = vpop.eup %1598 }
  0xe9   :  { %1600 = vtanh.f32 %v347_v43  ;;  %1390 = vmatmul.msk.f32.gmra.mxu0 %vm100_vm0, %v57_v40  ;;  %1467 = vmatmul.msk.f32.gmra.mxu2 %vm574_vm1, %v1599_v46 }
  0xea   :  { %1602 = vtanh.f32 %v437_v49 }
  0xed   :  { %v457_v42 = vpop.f32.mrf.mxu3 }
  0xee   :  { %v349_v47 = vpop.f32.mrf.mxu0  ;;  %v458_v45 = vadd.f32 %v2029_v33, %v457_v42 }
  0xef   :  { %v1601_v50 = vpop.eup %1600  ;;  %v350_v51 = vadd.f32 %v2029_v33, %v349_v47 }
  0xf0   :  { %1438 = vmatmul.msk.f32.gmra.mxu1 %vm574_vm1, %v1601_v50  ;;  %v1603_v54 = vpop.eup %1602 }
  0xf1   :  { %1604 = vtanh.f32 %v350_v51  ;;  %1391 = vmatmul.msk.f32.gmra.mxu0 %vm100_vm0, %v58_v48  ;;  %1468 = vmatmul.msk.f32.gmra.mxu2 %vm574_vm1, %v1603_v54 }
  0xf2   :  { %1606 = vtanh.f32 %v440_v57 }
  0xf5   :  { %v460_v50 = vpop.f32.mrf.mxu3 }
  0xf6   :  { %v352_v55 = vpop.f32.mrf.mxu0  ;;  %v461_v52 = vadd.f32 %v2029_v33, %v460_v50 }
  0xf7   :  { %v1605_v58 = vpop.eup %1604  ;;  %v353_v59 = vadd.f32 %v2029_v33, %v352_v55 }
  0xf8   :  { %1439 = vmatmul.msk.f32.gmra.mxu1 %vm574_vm1, %v1605_v58  ;;  %v1607_v62 = vpop.eup %1606 }
  0xf9   :  { %1608 = vtanh.f32 %v353_v59  ;;  %1392 = vmatmul.msk.f32.gmra.mxu0 %vm100_vm0, %v59_v56  ;;  %1469 = vmatmul.msk.f32.gmra.mxu2 %vm574_vm1, %v1607_v62 }
  0xfa   :  { %1610 = vtanh.f32 %v443_v1 }
  0xfd   :  { %v463_v57 = vpop.f32.mrf.mxu3 }
  0xfe   :  { %v355_v63 = vpop.f32.mrf.mxu0  ;;  %v464_v59 = vadd.f32 %v2029_v33, %v463_v57 }
  0xff   :  { %v1609_v2 = vpop.eup %1608  ;;  %v356_v3 = vadd.f32 %v2029_v33, %v355_v63 }
 0x100   :  { %1440 = vmatmul.msk.f32.gmra.mxu1 %vm574_vm1, %v1609_v2  ;;  %v1611_v6 = vpop.eup %1610 }
 0x101   :  { %1612 = vtanh.f32 %v356_v3  ;;  %1393 = vmatmul.msk.f32.gmra.mxu0 %vm100_vm0, %v60_v0  ;;  %1470 = vmatmul.msk.f32.gmra.mxu2 %vm574_vm1, %v1611_v6 }
 0x102   :  { %1614 = vtanh.f32 %v446_v10 }
 0x105   :  { %v466_v0 = vpop.f32.mrf.mxu3 }
 0x106   :  { %v358_v7 = vpop.f32.mrf.mxu0  ;;  %v467_v2 = vadd.f32 %v2029_v33, %v466_v0 }
 0x107   :  { %v1613_v11 = vpop.eup %1612  ;;  %v359_v12 = vadd.f32 %v2029_v33, %v358_v7 }
 0x108   :  { %1441 = vmatmul.msk.f32.gmra.mxu1 %vm574_vm1, %v1613_v11  ;;  %v1615_v17 = vpop.eup %1614 }
 0x109   :  { %1616 = vtanh.f32 %v359_v12  ;;  %1394 = vmatmul.msk.f32.gmra.mxu0 %vm100_vm0, %v61_v8  ;;  %1471 = vmatmul.msk.f32.gmra.mxu2 %vm574_vm1, %v1615_v17 }
 0x10d   :  { %v2217_v14 = vpop.f32.mrf.mxu1  ;;  %v469_v7 = vpop.f32.mrf.mxu3 }
 0x10e   :  { %v361_v18 = vpop.f32.mrf.mxu0  ;;  %v470_v10 = vadd.f32 %v2029_v33, %v469_v7 }
 0x10f   :  { %v1617_v21 = vpop.eup %1616  ;;  %v362_v22 = vadd.f32 %v2029_v33, %v361_v18 }
 0x110   :  { %1442 = vmatmul.msk.f32.gmra.mxu1 %vm574_vm1, %v1617_v21 }
 0x111   :  { %1618 = vtanh.f32 %v362_v22  ;;  %1395 = vmatmul.msk.f32.gmra.mxu0 %vm100_vm0, %v62_v19 }
 0x112   :  { %1620 = vtanh.f32 %v449_v20 }
 0x115   :  { %v2231_v24 = vpop.f32.mrf.mxu1  ;;  %v472_v17 = vpop.f32.mrf.mxu3 }
 0x116   :  { %v364_v26 = vpop.f32.mrf.mxu0  ;;  %v473_v19 = vadd.f32 %v2029_v33, %v472_v17 }
 0x117   :  { %v1619_v29 = vpop.eup %1618  ;;  %v365_v30 = vadd.f32 %v2029_v33, %v364_v26 }
 0x118   :  { %v1621_v31 = vpop.eup %1620  ;;  %1443 = vmatmul.msk.f32.gmra.mxu1 %vm574_vm1, %v1619_v29 }
 0x119   :  { %1622 = vtanh.f32 %v365_v30  ;;  %1396 = vmatmul.msk.f32.gmra.mxu0 %vm100_vm0, %v63_v27  ;;  %1472 = vmatmul.msk.f32.gmra.mxu2 %vm574_vm1, %v1621_v31 }
 0x11a   :  { %1624 = vtanh.f32 %v452_v28 }
 0x11d   :  { %v2241_v32 = vpop.f32.mrf.mxu1  ;;  %v475_v25 = vpop.f32.mrf.mxu3 }
 0x11e   :  { %v367_v35 = vpop.f32.mrf.mxu0  ;;  %v476_v27 = vadd.f32 %v2029_v33, %v475_v25 }
 0x11f   :  { %v1623_v38 = vpop.eup %1622  ;;  %v368_v39 = vadd.f32 %v2029_v33, %v367_v35 }
 0x120   :  { %v1625_v40 = vpop.eup %1624  ;;  %1444 = vmatmul.msk.f32.gmra.mxu1 %vm574_vm1, %v1623_v38 }
 0x121   :  { %1626 = vtanh.f32 %v368_v39  ;;  %1397 = vmatmul.msk.f32.gmra.mxu0 %vm100_vm0, %v64_v36  ;;  %1473 = vmatmul.msk.f32.gmra.mxu2 %vm574_vm1, %v1625_v40 }
 0x122   :  { %1628 = vtanh.f32 %v455_v37 }
 0x125   :  { %v2251_v41 = vpop.f32.mrf.mxu1  ;;  %v478_v34 = vpop.f32.mrf.mxu3 }
 0x126   :  { %v370_v43 = vpop.f32.mrf.mxu0  ;;  %v479_v36 = vadd.f32 %v2029_v33, %v478_v34 }
 0x127   :  { %v1627_v46 = vpop.eup %1626  ;;  %v371_v47 = vadd.f32 %v2029_v33, %v370_v43 }
 0x128   :  { %v1629_v48 = vpop.eup %1628  ;;  %1445 = vmatmul.msk.f32.gmra.mxu1 %vm574_vm1, %v1627_v46 }
 0x129   :  { %1630 = vtanh.f32 %v371_v47  ;;  %1398 = vmatmul.msk.f32.gmra.mxu0 %vm100_vm0, %v65_v44  ;;  %1474 = vmatmul.msk.f32.gmra.mxu2 %vm574_vm1, %v1629_v48 }
 0x12a   :  { %1632 = vtanh.f32 %v458_v45 }
 0x12d   :  { %v2261_v49 = vpop.f32.mrf.mxu1  ;;  %v481_v43 = vpop.f32.mrf.mxu3 }
 0x12e   :  { %v373_v51 = vpop.f32.mrf.mxu0  ;;  %v482_v45 = vadd.f32 %v2029_v33, %v481_v43 }
 0x12f   :  { %v1631_v53 = vpop.eup %1630  ;;  %v374_v54 = vadd.f32 %v2029_v33, %v373_v51 }
 0x130   :  { %v1633_v55 = vpop.eup %1632  ;;  %1446 = vmatmul.msk.f32.gmra.mxu1 %vm574_vm1, %v1631_v53 }
 0x131   :  { %1634 = vtanh.f32 %v374_v54  ;;  %1475 = vmatmul.msk.f32.gmra.mxu2 %vm574_vm1, %v1633_v55 }
 0x132   :  { %1636 = vtanh.f32 %v461_v52 }
 0x135   :  { %v2267_v56 = vpop.f32.mrf.mxu1  ;;  %v484_v52 = vpop.f32.mrf.mxu3 }
 0x136   :  { %v376_v58 = vpop.f32.mrf.mxu0  ;;  %v485_v54 = vadd.f32 %v2029_v33, %v484_v52 }
 0x137   :  { %v1635_v60 = vpop.eup %1634  ;;  %v377_v61 = vadd.f32 %v2029_v33, %v376_v58 }
 0x138   :  { %v1637_v62 = vpop.eup %1636  ;;  %1447 = vmatmul.msk.f32.gmra.mxu1 %vm574_vm1, %v1635_v60 }
 0x139   :  { %1638 = vtanh.f32 %v377_v61  ;;  %1476 = vmatmul.msk.f32.gmra.mxu2 %vm574_vm1, %v1637_v62 }
 0x13a   :  { %1640 = vtanh.f32 %v464_v59 }
 0x13d   :  { %v2273_v63 = vpop.f32.mrf.mxu1  ;;  %v487_v61 = vpop.f32.mrf.mxu3 }
 0x13e   :  { %v379_v1 = vpop.f32.mrf.mxu0  ;;  %v488_v0 = vadd.f32 %v2029_v33, %v487_v61 }
 0x13f   :  { %v1639_v3 = vpop.eup %1638  ;;  %v380_v4 = vadd.f32 %v2029_v33, %v379_v1 }
 0x140   :  { %v1641_v5 = vpop.eup %1640  ;;  %1448 = vmatmul.msk.f32.gmra.mxu1 %vm574_vm1, %v1639_v3 }
 0x141   :  { %1642 = vtanh.f32 %v380_v4  ;;  %1477 = vmatmul.msk.f32.gmra.mxu2 %vm574_vm1, %v1641_v5 }
 0x142   :  { %1644 = vtanh.f32 %v467_v2 }
 0x145   :  { %v2279_v6 = vpop.f32.mrf.mxu1  ;;  %v490_v7 = vpop.f32.mrf.mxu3 }
 0x146   :  { %v382_v8 = vpop.f32.mrf.mxu0 }
 0x147   :  { %v1643_v11 = vpop.eup %1642  ;;  %v383_v12 = vadd.f32 %v2029_v33, %v382_v8 }
 0x148   :  { %v1645_v13 = vpop.eup %1644  ;;  %1449 = vmatmul.msk.f32.gmra.mxu1 %vm574_vm1, %v1643_v11 }
 0x149   :  { %1646 = vtanh.f32 %v383_v12  ;;  %1478 = vmatmul.msk.f32.gmra.mxu2 %vm574_vm1, %v1645_v13 }
 0x14a   :  { %1648 = vtanh.f32 %v470_v10  ;;  %v491_v10 = vadd.f32 %v2029_v33, %v490_v7 }
 0x14d   :  { %v2285_v16 = vpop.f32.mrf.mxu1 }
 0x14e   :  { %v385_v18 = vpop.f32.mrf.mxu0 }
 0x14f   :  { %v1647_v20 = vpop.eup %1646  ;;  %v386_v21 = vadd.f32 %v2029_v33, %v385_v18  ;;  %v2336_v18 = vld [vmem:[%s2606_s4] ss:$0 sm:$0xff] }
 0x150   :  { %v1649_v22 = vpop.eup %1648  ;;  %1450 = vmatmul.msk.f32.gmra.mxu1 %vm574_vm1, %v1647_v20  ;;  %v493_v20 = vpop.f32.mrf.mxu3 }
 0x151   :  { %1650 = vtanh.f32 %v386_v21  ;;  %1479 = vmatmul.msk.f32.gmra.mxu2 %vm574_vm1, %v1649_v22  ;;  %v494_v25 = vadd.f32 %v2029_v33, %v493_v20 }
 0x152   :  { %1652 = vtanh.f32 %v473_v19 }
 0x155   :  { %v2291_v23 = vpop.f32.mrf.mxu1 }
 0x156   :  { %v388_v26 = vpop.f32.mrf.mxu0 }
 0x157   :  { %v1651_v28 = vpop.eup %1650  ;;  %v389_v29 = vadd.f32 %v2029_v33, %v388_v26 }
 0x158   :  { %v1653_v30 = vpop.eup %1652  ;;  %1451 = vmatmul.msk.f32.gmra.mxu1 %vm574_vm1, %v1651_v28 }
 0x159   :  { %1654 = vtanh.f32 %v389_v29  ;;  %1480 = vmatmul.msk.f32.gmra.mxu2 %vm574_vm1, %v1653_v30 }
 0x15a   :  { %1656 = vtanh.f32 %v476_v27 }
 0x15c   :  { %v2303_v40 = vpop.f32.mrf.mxu2 }
 0x15d   :  { %v2297_v31 = vpop.f32.mrf.mxu1 }
 0x15e   :  { %v391_v35 = vpop.f32.mrf.mxu0 }
 0x15f   :  { %v1655_v37 = vpop.eup %1654  ;;  %v392_v38 = vadd.f32 %v2029_v33, %v391_v35 }
 0x160   :  { %v1657_v39 = vpop.eup %1656  ;;  %1452 = vmatmul.msk.f32.gmra.mxu1 %vm574_vm1, %v1655_v37 }
 0x161   :  { %1658 = vtanh.f32 %v392_v38  ;;  %1481 = vmatmul.msk.f32.gmra.mxu2 %vm574_vm1, %v1657_v39 }
 0x162   :  { %1660 = vtanh.f32 %v479_v36  ;;  %v496_v36 = vpop.f32.mrf.mxu3 }
 0x163   :  { %v497_v39 = vadd.f32 %v2029_v33, %v496_v36  ;;  %v794_v36 = vadd.f32 %v2336_v18, %v2251_v41 }
 0x164   :  { %v2311_v50 = vpop.f32.mrf.mxu2 }
 0x165   :  { %v2305_v42 = vpop.f32.mrf.mxu1 }
 0x166   :  { %v394_v44 = vpop.f32.mrf.mxu0  ;;  %v818_v52 = vadd.f32 %v2336_v18, %v2305_v42 }
 0x167   :  { %v1659_v46 = vpop.eup %1658  ;;  %v395_v47 = vadd.f32 %v2029_v33, %v394_v44 }
 0x168   :  { %v1661_v48 = vpop.eup %1660  ;;  %1453 = vmatmul.msk.f32.gmra.mxu1 %vm574_vm1, %v1659_v46 }
 0x169   :  { %1662 = vtanh.f32 %v395_v47  ;;  %1482 = vmatmul.msk.f32.gmra.mxu2 %vm574_vm1, %v1661_v48 }
 0x16a   :  { %1664 = vtanh.f32 %v482_v45 }
 0x16c   :  { %v2319_v59 = vpop.f32.mrf.mxu2 }
 0x16d   :  { %v2313_v51 = vpop.f32.mrf.mxu1 }
 0x16e   :  { %v397_v53 = vpop.f32.mrf.mxu0  ;;  %v821_v46 = vadd.f32 %v2336_v18, %v2313_v51 }
 0x16f   :  { %v1663_v55 = vpop.eup %1662  ;;  %v398_v57 = vadd.f32 %v2029_v33, %v397_v53 }
 0x170   :  { %v1665_v58 = vpop.eup %1664  ;;  %1454 = vmatmul.msk.f32.gmra.mxu1 %vm574_vm1, %v1663_v55 }
 0x171   :  { %1666 = vtanh.f32 %v398_v57  ;;  %1483 = vmatmul.msk.f32.gmra.mxu2 %vm574_vm1, %v1665_v58 }
 0x172   :  { %1668 = vtanh.f32 %v485_v54  ;;  %v499_v54 = vpop.f32.mrf.mxu3 }
 0x173   :  { %v500_v57 = vadd.f32 %v2029_v33, %v499_v54 }
 0x174   :  { %v2325_v4 = vpop.f32.mrf.mxu2 }
 0x175   :  { %v823_v60 = vpop.f32.mrf.mxu1 }
 0x176   :  { %v400_v62 = vpop.f32.mrf.mxu0  ;;  %v824_v34 = vadd.f32 %v2336_v18, %v823_v60 }
 0x177   :  { %v1667_v1 = vpop.eup %1666  ;;  %v401_v2 = vadd.f32 %v2029_v33, %v400_v62  ;;  %v815_v62 = vadd.f32 %v2336_v18, %v2297_v31 }
 0x178   :  { %v1669_v3 = vpop.eup %1668  ;;  %1455 = vmatmul.msk.f32.gmra.mxu1 %vm574_vm1, %v1667_v1 }
 0x179   :  { %1670 = vtanh.f32 %v401_v2  ;;  %1484 = vmatmul.msk.f32.gmra.mxu2 %vm574_vm1, %v1669_v3 }
 0x17a   :  { %1672 = vtanh.f32 %v488_v0  ;;  %v812_v0 = vadd.f32 %v2336_v18, %v2291_v23 }
 0x17c   :  { %v2331_v17 = vpop.f32.mrf.mxu2 }
 0x17d   :  { %v826_v5 = vpop.f32.mrf.mxu1 }
 0x17e   :  { %v403_v8 = vpop.f32.mrf.mxu0  ;;  %v827_v29 = vadd.f32 %v2336_v18, %v826_v5 }
 0x17f   :  { %v1671_v11 = vpop.eup %1670  ;;  %v404_v12 = vadd.f32 %v2029_v33, %v403_v8 }
 0x180   :  { %v1673_v13 = vpop.eup %1672  ;;  %1456 = vmatmul.msk.f32.gmra.mxu1 %vm574_vm1, %v1671_v11  ;;  %v806_v11 = vadd.f32 %v2336_v18, %v2279_v6  ;;  %v800_v6 = vadd.f32 %v2336_v18, %v2267_v56 }
 0x181   :  { %1674 = vtanh.f32 %v404_v12  ;;  %1485 = vmatmul.msk.f32.gmra.mxu2 %vm574_vm1, %v1673_v13 }
 0x182   :  { %1676 = vtanh.f32 %v491_v10  ;;  %v809_v10 = vadd.f32 %v2336_v18, %v2285_v16 }
 0x184   :  { %v2344_v30 = vpop.f32.mrf.mxu2 }
 0x185   :  { %v829_v19 = vpop.f32.mrf.mxu1 }
 0x186   :  { %v830_v21 = vadd.f32 %v2336_v18, %v829_v19  ;;  %v406_v22 = vpop.f32.mrf.mxu0 }
 0x187   :  { %v1675_v26 = vpop.eup %1674  ;;  %v407_v27 = vadd.f32 %v2029_v33, %v406_v22  ;;  %v803_v22 = vadd.f32 %v2336_v18, %v2273_v63 }
 0x188   :  { %v1677_v28 = vpop.eup %1676  ;;  %1678 = vtanh.f32 %v830_v21  ;;  %1457 = vmatmul.msk.f32.gmra.mxu1 %vm574_vm1, %v1675_v26 }
 0x189   :  { %1680 = vtanh.f32 %v407_v27  ;;  %1486 = vmatmul.msk.f32.gmra.mxu2 %vm574_vm1, %v1677_v28  ;;  %v422_v27 = vadd.f32 %v2029_v33, %v2110_v9 }
 0x18a   :  { %1682 = vtanh.f32 %v494_v25 }
 0x18b   :  { %1684 = vtanh.f32 %v827_v29 }
 0x18c   :  { %1686 = vtanh.f32 %v824_v34  ;;  %v2356_v48 = vpop.f32.mrf.mxu2  ;;  %v797_v34 = vadd.f32 %v2336_v18, %v2261_v49 }
 0x18d   :  { %v2347_v35 = vpop.f32.mrf.mxu1 }
 0x18e   :  { %v1679_v37 = vpop.eup %1678  ;;  %v409_v38 = vpop.f32.mrf.mxu0 }
 0x18f   :  { %v1681_v43 = vpop.eup %1680  ;;  %v410_v44 = vadd.f32 %v2029_v33, %v409_v38  ;;  %1490 = vmatpush.xpose.msk.msrb.mxu2 %vm574_vm1, %v1679_v37  ;;  %v425_v37 = vadd.f32 %v2029_v33, %v2122_v15 }
 0x190   :  { %v1683_v45 = vpop.eup %1682  ;;  %1458 = vmatmul.msk.f32.gmra.mxu1 %vm574_vm1, %v1681_v43  ;;  %v791_v43 = vadd.f32 %v2336_v18, %v2241_v32 }
 0x191   :  { %1688 = vtanh.f32 %v410_v44  ;;  %1487 = vmatmul.msk.f32.gmra.mxu2 %vm574_vm1, %v1683_v45  ;;  %v1685_v47 = vpop.eup %1684  ;;  %v788_v44 = vadd.f32 %v2336_v18, %v2231_v24 }
 0x192   :  { %1690 = vtanh.f32 %v497_v39  ;;  %v1687_v51 = vpop.eup %1686 }
 0x193   :  { %1491 = vmatpush.xpose.msk.msrb.mxu2 %vm574_vm1, %v1685_v47  ;;  %1692 = vtanh.f32 %v821_v46  ;;  %v785_v47 = vadd.f32 %v2336_v18, %v2217_v14  ;;  %v920_v14 = vadd.f32 %v2336_v18, %v2356_v48  ;;  %v914_v48 = vadd.f32 %v2336_v18, %v2331_v17 }
 0x194   :  { %1694 = vtanh.f32 %v818_v52  ;;  %v905_v17 = vadd.f32 %v2336_v18, %v2311_v50 }
 0x195   :  { %v2361_v53 = vpop.f32.mrf.mxu1 }
 0x196   :  { %v412_v55 = vpop.f32.mrf.mxu0 }
 0x197   :  { %v1689_v58 = vpop.eup %1688  ;;  %v413_v60 = vadd.f32 %v2029_v33, %v412_v55  ;;  %1492 = vmatpush.xpose.msk.msrb.mxu2 %vm574_vm1, %v1687_v51 }
 0x198   :  { %v1691_v61 = vpop.eup %1690  ;;  %1459 = vmatmul.msk.f32.gmra.mxu1 %vm574_vm1, %v1689_v58 }
 0x199   :  { %1696 = vtanh.f32 %v413_v60  ;;  %1488 = vmatmul.msk.f32.gmra.mxu2 %vm574_vm1, %v1691_v61  ;;  %v1693_v42 = vpop.eup %1692  ;;  %v917_v60 = vadd.f32 %v2336_v18, %v2344_v30 }
 0x19a   :  { %1698 = vtanh.f32 %v500_v57  ;;  %v1695_v3 = vpop.eup %1694 }
 0x19b   :  { %1493 = vmatpush.xpose.msk.msrb.mxu2 %vm574_vm1, %v1693_v42  ;;  %1700 = vtanh.f32 %v815_v62 }
 0x19c   :  { %v2373_v1 = vpop.f32.mrf.mxu2  ;;  %1702 = vtanh.f32 %v812_v0 }
 0x19d   :  { %v2375_v2 = vpop.f32.mrf.mxu1  ;;  %v923_v54 = vadd.f32 %v2336_v18, %v2373_v1  ;;  %v911_v1 = vadd.f32 %v2336_v18, %v2325_v4 }
 0x19e   :  { %v415_v31 = vpop.f32.mrf.mxu0 }
 0x19f   :  { %v1697_v5 = vpop.eup %1696  ;;  %v416_v7 = vadd.f32 %v2029_v33, %v415_v31  ;;  %1494 = vmatpush.xpose.msk.msrb.mxu2 %vm574_vm1, %v1695_v3 }
 0x1a0   :  { %v1699_v8 = vpop.eup %1698  ;;  %1460 = vmatmul.msk.f32.gmra.mxu1 %vm574_vm1, %v1697_v5  ;;  %v908_v5 = vadd.f32 %v2336_v18, %v2319_v59 }
 0x1a1   :  { %1704 = vtanh.f32 %v416_v7  ;;  %1489 = vmatmul.msk.f32.gmra.mxu2 %vm574_vm1, %v1699_v8  ;;  %v1701_v23 = vpop.eup %1700 }
 0x1a2   :  { %1706 = vtanh.f32 %v809_v10  ;;  %v1703_v19 = vpop.eup %1702  ;;  %v902_v10 = vadd.f32 %v2336_v18, %v2303_v40 }
 0x1a3   :  { %1495 = vmatpush.xpose.msk.msrb.mxu2 %vm574_vm1, %v1701_v23  ;;  %1708 = vtanh.f32 %v806_v11 }
 0x1a4   :  { %v925_v12 = vpop.f32.mrf.mxu2 }
 0x1a5   :  { %v2386_v13 = vpop.f32.mrf.mxu1  ;;  %v926_v32 = vadd.f32 %v2336_v18, %v925_v12 }
 0x1a6   :  { %v418_v20 = vpop.f32.mrf.mxu0 }
 0x1a7   :  { %v1705_v21 = vpop.eup %1704  ;;  %v419_v16 = vadd.f32 %v2029_v33, %v418_v20  ;;  %1496 = vmatpush.xpose.msk.msrb.mxu2 %vm574_vm1, %v1703_v19 }
 0x1a8   :  { %1461 = vmatmul.msk.f32.gmra.mxu1 %vm574_vm1, %v1705_v21  ;;  %v1707_v25 = vpop.eup %1706 }
 0x1a9   :  { %1710 = vtanh.f32 %v419_v16  ;;  %v1709_v29 = vpop.eup %1708 }
 0x1aa   :  { %1712 = vtanh.f32 %v803_v22 }
 0x1ab   :  { %1497 = vmatpush.xpose.msk.msrb.mxu2 %vm574_vm1, %v1707_v25  ;;  %1714 = vtanh.f32 %v800_v6 }
 0x1ac   :  { %v2396_v26 = vpop.f32.mrf.mxu2  ;;  %1716 = vtanh.f32 %v422_v27 }
 0x1ad   :  { %v2400_v28 = vpop.f32.mrf.mxu1  ;;  %1718 = vtanh.f32 %v797_v34 }
 0x1ae   :  { %1720 = vtanh.f32 %v794_v36 }
 0x1af   :  { %v1711_v63 = vpop.eup %1710  ;;  %1498 = vmatpush.xpose.msk.msrb.mxu2 %vm574_vm1, %v1709_v29  ;;  %1722 = vtanh.f32 %v425_v37 }
 0x1b0   :  { %1462 = vmatmul.msk.f32.gmra.mxu1 %vm574_vm1, %v1711_v63  ;;  %v1713_v56 = vpop.eup %1712  ;;  %1724 = vtanh.f32 %v791_v43 }
 0x1b1   :  { %v1715_v39 = vpop.eup %1714  ;;  %1726 = vtanh.f32 %v788_v44 }
 0x1b2   :  { %v1717_v49 = vpop.eup %1716  ;;  %1728 = vtanh.f32 %v926_v32 }
 0x1b3   :  { %1499 = vmatpush.xpose.msk.msrb.mxu2 %vm574_vm1, %v1713_v56  ;;  %v1719_v41 = vpop.eup %1718  ;;  %1730 = vtanh.f32 %v785_v47 }
 0x1b4   :  { %v2409_v9 = vpop.f32.mrf.mxu2  ;;  %v1721_v45 = vpop.eup %1720  ;;  %1732 = vtanh.f32 %v923_v54 }
 0x1b5   :  { %v2413_v38 = vpop.f32.mrf.mxu1  ;;  %v1723_v46 = vpop.eup %1722  ;;  %1734 = vtanh.f32 %v920_v14 }
 0x1b6   :  { %v1725_v52 = vpop.eup %1724  ;;  %1736 = vtanh.f32 %v917_v60 }
 0x1b7   :  { %1500 = vmatpush.xpose.msk.msrb.mxu2 %vm574_vm1, %v1715_v39  ;;  %v1727_v55 = vpop.eup %1726  ;;  %1738 = vtanh.f32 %v914_v48 }
 0x1b8   :  { %1463 = vmatmul.msk.f32.gmra.mxu1 %vm574_vm1, %v1717_v49  ;;  %v1729_v57 = vpop.eup %1728  ;;  %1740 = vtanh.f32 %v911_v1 }
 0x1b9   :  { %v1731_v58 = vpop.eup %1730  ;;  %1742 = vtanh.f32 %v908_v5 }
 0x1ba   :  { %v1733_v42 = vpop.eup %1732  ;;  %1744 = vtanh.f32 %v905_v17 }
 0x1bb   :  { %1501 = vmatpush.xpose.msk.msrb.mxu2 %vm574_vm1, %v1719_v41  ;;  %v1735_v0 = vpop.eup %1734  ;;  %1746 = vtanh.f32 %v902_v10 }
 0x1bc   :  { %v2422_v33 = vpop.f32.mrf.mxu2  ;;  %v1737_v3 = vpop.eup %1736 }
 0x1bd   :  { %v2424_v15 = vpop.f32.mrf.mxu1  ;;  %v1739_v7 = vpop.eup %1738 }
 0x1be   :  { %v1741_v4 = vpop.eup %1740  ;;  %v851_v60 = vadd.f32 %v2336_v18, %v2424_v15  ;;  %v842_v15 = vadd.f32 %v2336_v18, %v2386_v13  ;;  %v833_v13 = vadd.f32 %v2336_v18, %v2347_v35 }
 0x1bf   :  { %1502 = vmatpush.xpose.msk.msrb.mxu2 %vm574_vm1, %v1721_v45  ;;  %v1743_v11 = vpop.eup %1742 }
 0x1c0   :  { %1464 = vmatmul.msk.f32.gmra.mxu1 %vm574_vm1, %v1723_v46  ;;  %v1745_v12 = vpop.eup %1744 }
 0x1c1   :  { %v1747_v50 = vpop.eup %1746 }
 0x1c3   :  { %1503 = vmatpush.xpose.msk.msrb.mxu2 %vm574_vm1, %v1725_v52 }
 0x1c4   :  { %v2432_v24 = vpop.f32.mrf.mxu2 }
 0x1c5   :  { %v2436_v51 = vpop.f32.mrf.mxu1 }
 0x1c7   :  { %1504 = vmatpush.xpose.msk.msrb.mxu2 %vm574_vm1, %v1727_v55 }
 0x1cb   :  { %1505 = vmatpush.xpose.msk.msrb.mxu2 %vm574_vm1, %v1731_v58 }
 0x1cc   :  { %v2447_v62 = vpop.f32.mrf.mxu2 }
 0x1cd   :  { %v2445_v61 = vpop.f32.mrf.mxu1 }
 0x1ce   :  { %v857_v54 = vadd.f32 %v2336_v18, %v2445_v61  ;;  %v848_v61 = vadd.f32 %v2336_v18, %v2413_v38  ;;  %v839_v38 = vadd.f32 %v2336_v18, %v2375_v2 }
 0x1cf   :  { %1524 = vmatpush.xpose.msk.msra.mxu2 %vm574_vm1, %v1729_v57  ;;  %v854_v57 = vadd.f32 %v2336_v18, %v2436_v51  ;;  %v845_v51 = vadd.f32 %v2336_v18, %v2400_v28  ;;  %v836_v28 = vadd.f32 %v2336_v18, %v2361_v53 }
 0x1d3   :  { %1525 = vmatpush.xpose.msk.msra.mxu2 %vm574_vm1, %v1733_v42 }
 0x1d4   :  { %v2456_v31 = vpop.f32.mrf.mxu2 }
 0x1d5   :  { %v859_v30 = vpop.f32.mrf.mxu1 }
 0x1d6   :  { %v860_v46 = vadd.f32 %v2336_v18, %v859_v30 }
 0x1d7   :  { %1526 = vmatpush.xpose.msk.msra.mxu2 %vm574_vm1, %v1735_v0 }
 0x1db   :  { %1527 = vmatpush.xpose.msk.msra.mxu2 %vm574_vm1, %v1737_v3 }
 0x1dc   :  { %v2466_v23 = vpop.f32.mrf.mxu2 }
 0x1dd   :  { %v862_v8 = vpop.f32.mrf.mxu1 }
 0x1de   :  { %v863_v44 = vadd.f32 %v2336_v18, %v862_v8 }
 0x1df   :  { %1528 = vmatpush.xpose.msk.msra.mxu2 %vm574_vm1, %v1739_v7 }
 0x1e3   :  { %1529 = vmatpush.xpose.msk.msra.mxu2 %vm574_vm1, %v1741_v4 }
 0x1e4   :  { %v2471_v19 = vpop.f32.mrf.mxu2 }
 0x1e5   :  { %v865_v59 = vpop.f32.mrf.mxu1 }
 0x1e6   :  { %v866_v39 = vadd.f32 %v2336_v18, %v865_v59 }
 0x1e7   :  { %1530 = vmatpush.xpose.msk.msra.mxu2 %vm574_vm1, %v1743_v11 }
 0x1eb   :  { %1531 = vmatpush.xpose.msk.msra.mxu2 %vm574_vm1, %v1745_v12 }
 0x1ec   :  { %v2473_v16 = vpop.f32.mrf.mxu2 }
 0x1ed   :  { %v868_v20 = vpop.f32.mrf.mxu1 }
 0x1ee   :  { %v869_v36 = vadd.f32 %v2336_v18, %v868_v20 }
 0x1ef   :  { %1532 = vmatpush.xpose.msk.msra.mxu2 %vm574_vm1, %v1747_v50 }
 0x1f4   :  { %v2475_v22 = vpop.f32.mrf.mxu2 }
 0x1f5   :  { %v871_v21 = vpop.f32.mrf.mxu1 }
 0x1f6   :  { %v872_v63 = vadd.f32 %v2336_v18, %v871_v21 }
 0x1fc   :  { %v2479_v29 = vpop.f32.mrf.mxu2 }
 0x1fd   :  { %v874_v40 = vpop.f32.mrf.mxu1 }
 0x1fe   :  { %v875_v27 = vadd.f32 %v2336_v18, %v874_v40 }
 0x204   :  { %v2488_v49 = vpop.f32.mrf.mxu2 }
 0x205   :  { %v877_v25 = vpop.f32.mrf.mxu1 }
 0x206   :  { %v878_v6 = vadd.f32 %v2336_v18, %v877_v25 }
 0x208   :  { %1748 = vtanh.f32 %v878_v6 }
 0x209   :  { %1750 = vtanh.f32 %v875_v27 }
 0x20a   :  { %1752 = vtanh.f32 %v872_v63 }
 0x20b   :  { %1754 = vtanh.f32 %v869_v36 }
 0x20c   :  { %1756 = vtanh.f32 %v866_v39  ;;  %v2498_v52 = vpop.f32.mrf.mxu2 }
 0x20d   :  { %v2482_v34 = vpop.f32.mrf.mxu1  ;;  %1758 = vtanh.f32 %v863_v44  ;;  %v965_v36 = vadd.f32 %v2336_v18, %v2498_v52  ;;  %v962_v44 = vadd.f32 %v2336_v18, %v2488_v49  ;;  %v956_v49 = vadd.f32 %v2336_v18, %v2475_v22  ;;  %v1040_v22 = vld [vmem:[%s2607_s5] sm:$0x1]  ;;  %s1861_s5 = smov [#allocation3]  }
 0x20e   :  { %v1749_v56 = vpop.eup %1748  ;;  %1760 = vtanh.f32 %v860_v46  ;;  %v881_v46 = vadd.f32 %v2336_v18, %v2482_v34  ;;  %1506 = vmatmul.msk.f32.vlgmr.msrb.gmra.mxu2 %vm574_vm1, %v1040_v22  ;;  %s1351_s15 = sshll.u32 %s1861_s5, 4  ;;  %s1352_s15 = int_to_ptr.vmem [resolvable:$true] %s1351_s15 }
 0x20f   :  { %1507 = vmatpush.xpose.msk.msrb.mxu3 %vm574_vm1, %v1749_v56  ;;  %v1751_v37 = vpop.eup %1750  ;;  %1762 = vtanh.f32 %v857_v54 }
 0x210   :  { %v1753_v41 = vpop.eup %1752  ;;  %1764 = vtanh.f32 %v854_v57  ;;  %v950_v57 = vadd.f32 %v2336_v18, %v2471_v19 }
 0x211   :  { %v1755_v45 = vpop.eup %1754  ;;  %1766 = vtanh.f32 %v851_v60  ;;  %v944_v60 = vadd.f32 %v2336_v18, %v2456_v31  ;;  %v938_v31 = vadd.f32 %v2336_v18, %v2432_v24  ;;  %v929_v24 = vadd.f32 %v2336_v18, %v2396_v26 }
 0x212   :  { %v1757_v47 = vpop.eup %1756  ;;  %1768 = vtanh.f32 %v848_v61  ;;  %v941_v61 = vadd.f32 %v2336_v18, %v2447_v62  ;;  %v932_v62 = vadd.f32 %v2336_v18, %v2409_v9 }
 0x213   :  { %1508 = vmatpush.xpose.msk.msrb.mxu3 %vm574_vm1, %v1751_v37  ;;  %v1759_v55 = vpop.eup %1758  ;;  %1770 = vtanh.f32 %v845_v51 }
 0x214   :  { %v1761_v58 = vpop.eup %1760  ;;  %v967_v42 = vpop.f32.mrf.mxu2  ;;  %1772 = vtanh.f32 %v842_v15 }
 0x215   :  { %v2490_v43 = vpop.f32.mrf.mxu1  ;;  %v1763_v48 = vpop.eup %1762  ;;  %1774 = vtanh.f32 %v839_v38  ;;  %v968_v6 = vadd.f32 %v2336_v18, %v967_v42  ;;  %v1041_v42 = vld [vmem:[#allocation2] sm:$0x1] }
 0x216   :  { %v1765_v1 = vpop.eup %1764  ;;  %1776 = vtanh.f32 %v836_v28 }
 0x217   :  { %1509 = vmatpush.xpose.msk.msrb.mxu3 %vm574_vm1, %v1753_v41  ;;  %v1767_v30 = vpop.eup %1766  ;;  %v884_v41 = vadd.f32 %v2336_v18, %v2490_v43 }
 0x218   :  { %v1769_v7 = vpop.eup %1768 }
 0x219   :  { %v1771_v17 = vpop.eup %1770 }
 0x21a   :  { %v1773_v10 = vpop.eup %1772 }
 0x21b   :  { %1510 = vmatpush.xpose.msk.msrb.mxu3 %vm574_vm1, %v1755_v45  ;;  %v1775_v53 = vpop.eup %1774 }
 0x21c   :  { %v970_v3 = vpop.f32.mrf.mxu2  ;;  %v1777_v50 = vpop.eup %1776 }
 0x21d   :  { %v2496_v32 = vpop.f32.mrf.mxu1  ;;  %v971_v35 = vadd.f32 %v2336_v18, %v970_v3 }
 0x21e   :  { %v887_v56 = vadd.f32 %v2336_v18, %v2496_v32  ;;  %v959_v32 = vadd.f32 %v2336_v18, %v2479_v29  ;;  %v953_v29 = vadd.f32 %v2336_v18, %v2473_v16 }
 0x21f   :  { %1511 = vmatpush.xpose.msk.msrb.mxu3 %vm574_vm1, %v1757_v47 }
 0x223   :  { %1512 = vmatpush.xpose.msk.msrb.mxu3 %vm574_vm1, %v1759_v55 }
 0x224   :  { %v973_v8 = vpop.f32.mrf.mxu2 }
 0x225   :  { %v889_v14 = vpop.f32.mrf.mxu1  ;;  %v974_v2 = vadd.f32 %v2336_v18, %v973_v8 }
 0x226   :  { %v890_v21 = vadd.f32 %v2336_v18, %v889_v14  ;;  %v947_v14 = vadd.f32 %v2336_v18, %v2466_v23 }
 0x227   :  { %1513 = vmatpush.xpose.msk.msrb.mxu3 %vm574_vm1, %v1761_v58 }
 0x22b   :  { %1514 = vmatpush.xpose.msk.msrb.mxu3 %vm574_vm1, %v1763_v48  ;;  %v1860_v48 = vmov 0  }
 0x22c   :  { %1567 = vset.pattern.permute.xlu0 %v1860_v48 }
 0x22d   :  { %v892_v0 = vpop.f32.mrf.mxu1  ;;  %1044 = vperm.xlu0 %1567, %v1041_v42  }
 0x22e   :  { %v893_v12 = vadd.f32 %v2336_v18, %v892_v0 }
 0x22f   :  { %1515 = vmatpush.xpose.msk.msrb.mxu3 %vm574_vm1, %v1765_v1  ;;  %v935_v1 = vadd.f32 %v2336_v18, %v2422_v33 }
 0x233   :  { %1516 = vmatpush.xpose.msk.msrb.mxu3 %vm574_vm1, %v1767_v30 }
 0x235   :  { %v895_v5 = vpop.f32.mrf.mxu1 }
 0x236   :  { %v896_v59 = vadd.f32 %v2336_v18, %v895_v5 }
 0x237   :  { %1517 = vmatpush.xpose.msk.msrb.mxu3 %vm574_vm1, %v1769_v7 }
 0x23b   :  { %1518 = vmatpush.xpose.msk.msrb.mxu3 %vm574_vm1, %v1771_v17 }
 0x23d   :  { %v898_v4 = vpop.f32.mrf.mxu1 }
 0x23e   :  { %v899_v11 = vadd.f32 %v2336_v18, %v898_v4 }
 0x23f   :  { %1519 = vmatpush.xpose.msk.msrb.mxu3 %vm574_vm1, %v1773_v10 }
 0x240   :  { %1778 = vtanh.f32 %v899_v11  ;;  %v1341_v11 = vlaneseq }
 0x241   :  { %1780 = vtanh.f32 %v833_v13 }
 0x242   :  { %1782 = vtanh.f32 %v974_v2  ;;  %vm1343_vm5 = vcmp.lt.s32.totalorder %v1341_v11, 512 }
 0x243   :  { %1520 = vmatpush.xpose.msk.msrb.mxu3 %vm574_vm1, %v1775_v53  ;;  %1784 = vtanh.f32 %v896_v59 }
 0x244   :  { %1786 = vtanh.f32 %v893_v12 }
 0x245   :  { %1788 = vtanh.f32 %v971_v35 }
 0x246   :  { %v1779_v20 = vpop.eup %1778  ;;  %1790 = vtanh.f32 %v890_v21 }
 0x247   :  { %1521 = vmatpush.xpose.msk.msrb.mxu3 %vm574_vm1, %v1777_v50  ;;  %1533 = vmatpush.xpose.msk.msra.mxu2 %vm574_vm1, %v1779_v20  ;;  %v1781_v40 = vpop.eup %1780  ;;  %1792 = vtanh.f32 %v968_v6 }
 0x248   :  { %v1783_v25 = vpop.eup %1782  ;;  %1794 = vtanh.f32 %v887_v56 }
 0x249   :  { %v1785_v27 = vpop.eup %1784  ;;  %1796 = vtanh.f32 %v965_v36 }
 0x24a   :  { %v1787_v63 = vpop.eup %1786  ;;  %1798 = vtanh.f32 %v884_v41 }
 0x24b   :  { %1522 = vmatpush.xpose.msk.msrb.mxu3 %vm574_vm1, %v1781_v40  ;;  %1534 = vmatpush.xpose.msk.msra.mxu2 %vm574_vm1, %v1785_v27  ;;  %v1789_v37 = vpop.eup %1788  ;;  %1800 = vtanh.f32 %v962_v44 }
 0x24c   :  { %v1791_v39 = vpop.eup %1790  ;;  %1802 = vtanh.f32 %v881_v46 }
 0x24d   :  { %v1793_v45 = vpop.eup %1792  ;;  %1804 = vtanh.f32 %v959_v32 }
 0x24e   :  { %v1795_v43 = vpop.eup %1794  ;;  %1806 = vtanh.f32 %v956_v49  ;;  %1523 = vmatmul.msk.f32.vlgmr.msrb.gmra.mxu3 %vm574_vm1, %v1040_v22 }
 0x24f   :  { %1541 = vmatpush.xpose.msk.msra.mxu3 %vm574_vm1, %v1783_v25  ;;  %1535 = vmatpush.xpose.msk.msra.mxu2 %vm574_vm1, %v1787_v63  ;;  %v1797_v47 = vpop.eup %1796  ;;  %1808 = vtanh.f32 %v953_v29 }
 0x250   :  { %v1799_v52 = vpop.eup %1798  ;;  %1810 = vtanh.f32 %v950_v57 }
 0x251   :  { %v1801_v34 = vpop.eup %1800  ;;  %1812 = vtanh.f32 %v947_v14 }
 0x252   :  { %v1803_v54 = vpop.eup %1802  ;;  %1814 = vtanh.f32 %v944_v60 }
 0x253   :  { %1542 = vmatpush.xpose.msk.msra.mxu3 %vm574_vm1, %v1789_v37  ;;  %1536 = vmatpush.xpose.msk.msra.mxu2 %vm574_vm1, %v1791_v39  ;;  %v1805_v55 = vpop.eup %1804  ;;  %1816 = vtanh.f32 %v941_v61 }
 0x254   :  { %v1807_v16 = vpop.eup %1806  ;;  %1818 = vtanh.f32 %v938_v31 }
 0x255   :  { %v1809_v58 = vpop.eup %1808  ;;  %1820 = vtanh.f32 %v935_v1 }
 0x256   :  { %v1811_v19 = vpop.eup %1810  ;;  %1822 = vtanh.f32 %v932_v62 }
 0x257   :  { %1543 = vmatpush.xpose.msk.msra.mxu3 %vm574_vm1, %v1793_v45  ;;  %1537 = vmatpush.xpose.msk.msra.mxu2 %vm574_vm1, %v1795_v43  ;;  %v1813_v23 = vpop.eup %1812  ;;  %1824 = vtanh.f32 %v929_v24 }
 0x258   :  { %v1815_v0 = vpop.eup %1814 }
 0x259   :  { %v1817_v51 = vpop.eup %1816 }
 0x25a   :  { %v1819_v30 = vpop.eup %1818 }
 0x25b   :  { %1544 = vmatpush.xpose.msk.msra.mxu3 %vm574_vm1, %v1797_v47  ;;  %1538 = vmatpush.xpose.msk.msra.mxu2 %vm574_vm1, %v1799_v52  ;;  %v1821_v3 = vpop.eup %1820 }
 0x25c   :  { %v1823_v33 = vpop.eup %1822 }
 0x25d   :  { %v1825_v15 = vpop.eup %1824 }
 0x25f   :  { %1545 = vmatpush.xpose.msk.msra.mxu3 %vm574_vm1, %v1801_v34  ;;  %1539 = vmatpush.xpose.msk.msra.mxu2 %vm574_vm1, %v1803_v54 }
 0x262   :  { %1540 = vmatmul.msk.f32.vlgmr.msra.gmra.mxu2 %vm574_vm1, %v1040_v22 }
 0x263   :  { %1546 = vmatpush.xpose.msk.msra.mxu3 %vm574_vm1, %v1805_v55 }
 0x267   :  { %1547 = vmatpush.xpose.msk.msra.mxu3 %vm574_vm1, %v1807_v16 }
 0x26b   :  { %1548 = vmatpush.xpose.msk.msra.mxu3 %vm574_vm1, %v1809_v58 }
 0x26f   :  { %1549 = vmatpush.xpose.msk.msra.mxu3 %vm574_vm1, %v1811_v19 }
 0x273   :  { %1550 = vmatpush.xpose.msk.msra.mxu3 %vm574_vm1, %v1813_v23 }
 0x277   :  { %1551 = vmatpush.xpose.msk.msra.mxu3 %vm574_vm1, %v1815_v0 }
 0x27b   :  { %1552 = vmatpush.xpose.msk.msra.mxu3 %vm574_vm1, %v1817_v51 }
 0x27f   :  { %1553 = vmatpush.xpose.msk.msra.mxu3 %vm574_vm1, %v1819_v30 }
 0x283   :  { %1554 = vmatpush.xpose.msk.msra.mxu3 %vm574_vm1, %v1821_v3 }
 0x287   :  { %1555 = vmatpush.xpose.msk.msra.mxu3 %vm574_vm1, %v1823_v33 }
 0x28b   :  { %1556 = vmatpush.xpose.msk.msra.mxu3 %vm574_vm1, %v1825_v15 }
 0x28e   :  { %1557 = vmatmul.msk.f32.vlgmr.msra.gmra.mxu3 %vm574_vm1, %v1040_v22 }
 0x291   :  { %v1260_v9 = vpop.f32.mrf.mxu2 }
 0x29f   :  { %v1045_v5 = vpop.permute.xlu0 %1044 }
 0x2a0   :  { %v1047_v7 = vperm.slane %v1045_v5, 0 }
 0x2a2   :  { %v1261_v26 = vadd.f32 %v1260_v9, %v1047_v7 }
 0x2d1   :  { %v1280_v38 = vpop.f32.mrf.mxu3 }
 0x2d2   :  { %v1281_v28 = vadd.f32 %v1280_v38, %v1047_v7 }
 0x2d4   :  { %1826 = vtanh.f32 %v1281_v28 }
 0x2da   :  { %v1827_v10 = vpop.eup %1826 }
 0x2db   :  { %v1331_v59 = vrot.slane %v1827_v10, 7 }
 0x2e5   :  { %v1300_v17 = vpop.f32.mrf.mxu2 }
 0x2e6   :  { %v1301_v18 = vadd.f32 %v1300_v17, %v1047_v7 }
 0x2e8   :  { %1828 = vtanh.f32 %v1301_v18 }
 0x2e9   :  { %1830 = vtanh.f32 %v1261_v26 }
 0x2ee   :  { %v1829_v13 = vpop.eup %1828 }
 0x2ef   :  { %v1831_v2 = vpop.eup %1830  ;;  %v1332_v53 = vrot.slane %v1829_v13, 6 }
 0x2f0   :  { %v1335_v35 = vsel %vm1334_vm2, %v1831_v2, %v1331_v59 }
 0x311   :  { %v1320_v8 = vpop.f32.mrf.mxu3 }
 0x312   :  { %v1321_v4 = vadd.f32 %v1320_v8, %v1047_v7 }
 0x314   :  { %1832 = vtanh.f32 %v1321_v4 }
 0x31a   :  { %v1833_v12 = vpop.eup %1832 }
 0x31b   :  { %v1333_v50 = vrot.slane %v1833_v12, 5 }
 0x31d   :  { %v1337_v20 = vsel %vm1336_vm3, %v1332_v53, %v1333_v50 }
 0x31e   :  { %v1339_v21 = vsel %vm1338_vm4, %v1335_v35, %v1337_v20 }
 0x31f   :  { %1345 = vst.msk [vmem:[#allocation3] sm:$0xf] %vm1343_vm5, %v1339_v21 }
 0x320   :  { %1356 = dma.vmem_to_hbm [thread:$0]  %s1352_s15, 64, %s1354_s18, [#allocation4]  }
 0x321   :  { %1858 = dma.done.wait [#allocation4], 64  }
 0x322   :  { %1859 = vsyncadd [#allocation4], 4294967232 }
 0x323   :  { %1361 = vsyncpa [#allocation4], 1 }

</bundles_post_ra>
